<compile_context>
chip_gen: v6e
topology: v6e:2x2x1
jax: 0.10.0
libtpu: 0.0.40
codegen_flags: <defaults>
</compile_context>

<pallas_src>
import math
import functools

import jax
import jax.numpy as jnp
from jax import lax
from jax.experimental import pallas as pl
from jax.experimental.pallas import tpu as pltpu


def _choose_tile(n, preferred=256):
    """Largest tile <= preferred that divides n and is a multiple of 8, else n."""
    if n <= preferred:
        return n
    for t in range(preferred, 0, -1):
        if n % t == 0 and t % 8 == 0:
            return t
    return n


def _sdpa_kernel(seed_ref, q_ref, k_ref, v_ref, o_ref,
                 m_ref, l_ref, acc_ref,
                 *, scale_mul, dropout_p, tq, tk):
    b = pl.program_id(0)
    qi = pl.program_id(1)
    ki = pl.program_id(2)

    @pl.when(ki == 0)
    def _init():
        m_ref[...] = jnp.full(m_ref.shape, -jnp.inf, dtype=m_ref.dtype)
        l_ref[...] = jnp.zeros(l_ref.shape, dtype=l_ref.dtype)
        acc_ref[...] = jnp.zeros(acc_ref.shape, dtype=acc_ref.dtype)

    q = q_ref[0]                      # (tq, D), input dtype (bf16/f32) for MXU
    if scale_mul != 1.0:              # fold qk scaling into q: O(tq*D) work
        q = q * jnp.asarray(scale_mul, dtype=q.dtype)
    k = k_ref[0]                      # (tk, D)
    v = v_ref[0]                      # (tk, Dv)

    # s = q @ k^T without materializing a transpose of k.
    s = lax.dot_general(q, k, (((1,), (1,)), ((), ())),
                        preferred_element_type=jnp.float32)   # (tq, tk) f32

    # Online softmax update.
    m_prev = m_ref[...]
    m_new = jnp.maximum(m_prev, jnp.max(s, axis=-1, keepdims=True))
    alpha = jnp.exp(m_prev - m_new)
    e = jnp.exp(s - m_new)
    l_ref[...] = alpha * l_ref[...] + jnp.sum(e, axis=-1, keepdims=True)
    m_ref[...] = m_new

    p = e
    if dropout_p > 0.0:
        # Stateless counter-based hash -> Bernoulli(1-p) keep mask, integer
        # compare (no u32->f32 convert); 1/(1-p) rescale applied at finalize.
        rows = qi * tq + lax.broadcasted_iota(jnp.int32, (tq, tk), 0)
        cols = ki * tk + lax.broadcasted_iota(jnp.int32, (tq, tk), 1)
        lq_total = pl.num_programs(1) * tq
        lk_total = pl.num_programs(2) * tk
        lin = (b * lq_total + rows) * lk_total + cols
        x = lin.astype(jnp.uint32) ^ (
            seed_ref[0].astype(jnp.uint32) * jnp.uint32(0x9E3779B9))
        x = (x ^ (x >> jnp.uint32(16))) * jnp.uint32(0x7FEB352D)
        x = (x ^ (x >> jnp.uint32(15))) * jnp.uint32(0x846CA68B)
        x = x ^ (x >> jnp.uint32(16))
        r24 = (x >> jnp.uint32(8)).astype(jnp.int32)        # 24 random bits
        thresh = jnp.int32(int(dropout_p * float(1 << 24)))
        p = jnp.where(r24 >= thresh, e, 0.0)

    # Accumulate p @ v with rescaling of the previous partial result.
    acc_ref[...] = alpha * acc_ref[...] + jnp.dot(
        p.astype(v.dtype), v, preferred_element_type=jnp.float32)

    @pl.when(ki == pl.num_programs(2) - 1)
    def _finalize():
        keep_scale = 1.0 / (1.0 - dropout_p) if dropout_p > 0.0 else 1.0
        out = acc_ref[...] * ((1.0 / l_ref[...]) * keep_scale)
        o_ref[0] = out.astype(o_ref.dtype)


def sdpa_pallas(query, key, value, scale_factor=1.0, dropout_p=0.1, seed=0):
    B, Lq, D = query.shape
    Bk, Lk, Dk = key.shape
    Bv, Lkv, Dv = value.shape
    assert B == Bk == Bv and D == Dk and Lk == Lkv

    tq = _choose_tile(Lq, 256)
    tk = _choose_tile(Lk, 256)
    nq = Lq // tq
    nk = Lk // tk

    # qk.div(1/sqrt(scale_factor)) == qk * sqrt(scale_factor)
    scale_mul = float(math.sqrt(scale_factor))
    out_dtype = query.dtype

    kernel = functools.partial(
        _sdpa_kernel,
        scale_mul=scale_mul,
        dropout_p=float(dropout_p),
        tq=tq,
        tk=tk,
    )

    seed_arr = jnp.asarray([seed], dtype=jnp.int32)

    grid_spec = pltpu.PrefetchScalarGridSpec(
        num_scalar_prefetch=1,
        grid=(B, nq, nk),
        in_specs=[
            pl.BlockSpec((1, tq, D), lambda b, qi, ki, seed: (b, qi, 0)),
            pl.BlockSpec((1, tk, D), lambda b, qi, ki, seed: (b, ki, 0)),
            pl.BlockSpec((1, tk, Dv), lambda b, qi, ki, seed: (b, ki, 0)),
        ],
        out_specs=pl.BlockSpec((1, tq, Dv), lambda b, qi, ki, seed: (b, qi, 0)),
        scratch_shapes=[
            pltpu.VMEM((tq, 1), jnp.float32),    # running max
            pltpu.VMEM((tq, 1), jnp.float32),    # running sum
            pltpu.VMEM((tq, Dv), jnp.float32),   # output accumulator
        ],
    )

    return pl.pallas_call(
        kernel,
        out_shape=jax.ShapeDtypeStruct((B, Lq, Dv), out_dtype),
        grid_spec=grid_spec,
        compiler_params=pltpu.CompilerParams(
            dimension_semantics=("parallel", "parallel", "arbitrary"),
            vmem_limit_bytes=48 * 1024 * 1024,   # headroom on v7x's 64 MiB VMEM
        ),
    )(seed_arr, query, key, value)


def sdpa_reference(query, key, value, scale_factor=1.0):
    # Pure-JAX reference (dropout disabled), high-precision matmuls.
    qf = query.astype(jnp.float32)
    kf = key.astype(jnp.float32)
    vf = value.astype(jnp.float32)
    s = jnp.einsum("bqd,bkd->bqk", qf, kf,
                   precision=lax.Precision.HIGHEST) * math.sqrt(scale_factor)
    p = jax.nn.softmax(s, axis=-1)
    o = jnp.einsum("bqk,bkd->bqd", p, vf, precision=lax.Precision.HIGHEST)
    return o.astype(query.dtype)


if __name__ == "__main__":
    # Small shapes consistent with the module: (B, Lq, D), (B, Lk, D), (B, Lk, Dv).
    B, Lq, Lk, D, Dv = 2, 8, 8, 32, 32
    k0, k1, k2 = jax.random.split(jax.random.PRNGKey(0), 3)
    query = jax.random.normal(k0, (B, Lq, D), dtype=jnp.float32)
    key = jax.random.normal(k1, (B, Lk, D), dtype=jnp.float32)
    # NOTE: original module references a global `value`; defined here.
    value = jax.random.normal(k2, (B, Lk, Dv), dtype=jnp.float32)

    # Correctness check with dropout disabled (deterministic path).
    out_nodrop = sdpa_pallas(query, key, value, scale_factor=1.0, dropout_p=0.0)
    ref = sdpa_reference(query, key, value, scale_factor=1.0)
    assert out_nodrop.shape == ref.shape
    assert jnp.allclose(out_nodrop, ref, atol=2e-3, rtol=2e-3), "mismatch vs reference"

    # Dropout path (p=0.1, as in the module's default arguments).
    out = sdpa_pallas(query, key, value, scale_factor=1.0, dropout_p=0.1, seed=0)
    jax.block_until_ready(out)
    assert out.shape == (B, Lq, Dv)
    assert bool(jnp.all(jnp.isfinite(out)))
    print("KERNEL_OK")
</pallas_src>

<mosaic_0001>
module attributes {stable_mosaic.version = 11 : i64} {
  func.func @_sdpa_kernel(%arg0: i32, %arg1: i32, %arg2: i32, %arg3: memref<1xi32, #tpu.memory_space<smem>>, %arg4: memref<1x8x32xf32, #tpu.memory_space<vmem>>, %arg5: memref<1x8x32xf32, #tpu.memory_space<vmem>>, %arg6: memref<1x8x32xf32, #tpu.memory_space<vmem>>, %arg7: memref<1x8x32xf32, #tpu.memory_space<vmem>>, %arg8: memref<8x1xf32, #tpu.memory_space<vmem>>, %arg9: memref<8x1xf32, #tpu.memory_space<vmem>>, %arg10: memref<8x32xf32, #tpu.memory_space<vmem>>) attributes {dimension_semantics = [#tpu.dimension_semantics<parallel>, #tpu.dimension_semantics<parallel>, #tpu.dimension_semantics<arbitrary>], iteration_bounds = array<i64: 2, 1, 1>, scalar_prefetch = 1 : i64, scratch_operands = 3 : i64, tpu.core_type = #tpu.core_type<tc>, window_params = [{transform_indices = @transform_0, window_bounds = array<i64: 1, 8, 32>}, {transform_indices = @transform_1, window_bounds = array<i64: 1, 8, 32>}, {transform_indices = @transform_2, window_bounds = array<i64: 1, 8, 32>}, {transform_indices = @transform_3, window_bounds = array<i64: 1, 8, 32>}]} {
    %c0_i32 = arith.constant 0 : i32
    %0 = arith.cmpi eq, %arg2, %c0_i32 : i32
    %1 = arith.extui %0 : i1 to i32
    %c0_i32_0 = arith.constant 0 : i32
    %2 = arith.cmpi ne, %1, %c0_i32_0 : i32
    scf.if %2 {
      %cst_26 = arith.constant 0xFF800000 : f32
      %35 = vector.broadcast %cst_26 : f32 to vector<8x1xf32>
      %c0_27 = arith.constant 0 : index
      %c0_28 = arith.constant 0 : index
      %36 = vector.load %arg8[%c0_27, %c0_28] : memref<8x1xf32, #tpu.memory_space<vmem>>, vector<8x1xf32>
      tpu.vector_store %arg8[%c0_27, %c0_28], %35 {strides = array<i32>} : memref<8x1xf32, #tpu.memory_space<vmem>>, vector<8x1xf32>,
      %cst_29 = arith.constant 0.000000e+00 : f32
      %37 = vector.broadcast %cst_29 : f32 to vector<8x1xf32>
      %c0_30 = arith.constant 0 : index
      %c0_31 = arith.constant 0 : index
      %38 = vector.load %arg9[%c0_30, %c0_31] : memref<8x1xf32, #tpu.memory_space<vmem>>, vector<8x1xf32>
      tpu.vector_store %arg9[%c0_30, %c0_31], %37 {strides = array<i32>} : memref<8x1xf32, #tpu.memory_space<vmem>>, vector<8x1xf32>,
      %cst_32 = arith.constant 0.000000e+00 : f32
      %39 = vector.broadcast %cst_32 : f32 to vector<8x32xf32>
      %c0_33 = arith.constant 0 : index
      %c0_34 = arith.constant 0 : index
      %40 = vector.load %arg10[%c0_33, %c0_34] : memref<8x32xf32, #tpu.memory_space<vmem>>, vector<8x32xf32>
      tpu.vector_store %arg10[%c0_33, %c0_34], %39 {strides = array<i32>} : memref<8x32xf32, #tpu.memory_space<vmem>>, vector<8x32xf32>,
    } else {
    }
    %c0 = arith.constant 0 : index
    %c0_1 = arith.constant 0 : index
    %c0_2 = arith.constant 0 : index
    %3 = vector.load %arg4[%c0, %c0_1, %c0_2] : memref<1x8x32xf32, #tpu.memory_space<vmem>>, vector<1x8x32xf32>
    %4 = vector.shape_cast %3 : vector<1x8x32xf32> to vector<8x32xf32>
    %c0_3 = arith.constant 0 : index
    %c0_4 = arith.constant 0 : index
    %c0_5 = arith.constant 0 : index
    %5 = vector.load %arg5[%c0_3, %c0_4, %c0_5] : memref<1x8x32xf32, #tpu.memory_space<vmem>>, vector<1x8x32xf32>
    %6 = vector.shape_cast %5 : vector<1x8x32xf32> to vector<8x32xf32>
    %c0_6 = arith.constant 0 : index
    %c0_7 = arith.constant 0 : index
    %c0_8 = arith.constant 0 : index
    %7 = vector.load %arg6[%c0_6, %c0_7, %c0_8] : memref<1x8x32xf32, #tpu.memory_space<vmem>>, vector<1x8x32xf32>
    %8 = vector.shape_cast %7 : vector<1x8x32xf32> to vector<8x32xf32>
    %cst = arith.constant dense<0.000000e+00> : vector<8x8xf32>
    %9 = tpu.matmul %4, %6, %cst {dimension_numbers = #tpu.dot_dimension_numbers<[1], [1], [0], [0], [0, 0, 1, 0], [], []>} : vector<8x32xf32>, vector<8x32xf32>, vector<8x8xf32> -> vector<8x8xf32>
    %c0_9 = arith.constant 0 : index
    %c0_10 = arith.constant 0 : index
    %10 = vector.load %arg8[%c0_9, %c0_10] : memref<8x1xf32, #tpu.memory_space<vmem>>, vector<8x1xf32>
    %cst_11 = arith.constant dense<0xFF800000> : vector<8xf32>
    %11 = vector.multi_reduction <maximumf>, %9, %cst_11 [1] : vector<8x8xf32> to vector<8xf32>
    %12 = vector.shape_cast %11 : vector<8xf32> to vector<8x1xf32>
    %13 = arith.maximumf %10, %12 : vector<8x1xf32>
    %14 = arith.subf %10, %13 : vector<8x1xf32>
    %15 = math.exp %14 : vector<8x1xf32>
    %16 = vector.broadcast %13 : vector<8x1xf32> to vector<8x8xf32>
    %17 = arith.subf %9, %16 : vector<8x8xf32>
    %18 = math.exp %17 : vector<8x8xf32>
    %c0_12 = arith.constant 0 : index
    %c0_13 = arith.constant 0 : index
    %19 = vector.load %arg9[%c0_12, %c0_13] : memref<8x1xf32, #tpu.memory_space<vmem>>, vector<8x1xf32>
    %20 = arith.mulf %15, %19 : vector<8x1xf32>
    %cst_14 = arith.constant dense<0.000000e+00> : vector<8xf32>
    %21 = vector.multi_reduction <add>, %18, %cst_14 [1] : vector<8x8xf32> to vector<8xf32>
    %22 = vector.shape_cast %21 : vector<8xf32> to vector<8x1xf32>
    %23 = arith.addf %20, %22 : vector<8x1xf32>
    %c0_15 = arith.constant 0 : index
    %c0_16 = arith.constant 0 : index
    %24 = vector.load %arg9[%c0_15, %c0_16] : memref<8x1xf32, #tpu.memory_space<vmem>>, vector<8x1xf32>
    tpu.vector_store %arg9[%c0_15, %c0_16], %23 {strides = array<i32>} : memref<8x1xf32, #tpu.memory_space<vmem>>, vector<8x1xf32>,
    %c0_17 = arith.constant 0 : index
    %c0_18 = arith.constant 0 : index
    %25 = vector.load %arg8[%c0_17, %c0_18] : memref<8x1xf32, #tpu.memory_space<vmem>>, vector<8x1xf32>
    tpu.vector_store %arg8[%c0_17, %c0_18], %13 {strides = array<i32>} : memref<8x1xf32, #tpu.memory_space<vmem>>, vector<8x1xf32>,
    %c0_19 = arith.constant 0 : index
    %c0_20 = arith.constant 0 : index
    %26 = vector.load %arg10[%c0_19, %c0_20] : memref<8x32xf32, #tpu.memory_space<vmem>>, vector<8x32xf32>
    %27 = vector.broadcast %15 : vector<8x1xf32> to vector<8x32xf32>
    %28 = arith.mulf %27, %26 : vector<8x32xf32>
    %cst_21 = arith.constant dense<0.000000e+00> : vector<8x32xf32>
    %29 = tpu.matmul %18, %8, %cst_21 {dimension_numbers = #tpu.dot_dimension_numbers<[1], [0], [0], [1], [0, 0, 1, 1], [], []>} : vector<8x8xf32>, vector<8x32xf32>, vector<8x32xf32> -> vector<8x32xf32>
    %30 = arith.addf %28, %29 : vector<8x32xf32>
    %c0_22 = arith.constant 0 : index
    %c0_23 = arith.constant 0 : index
    %31 = vector.load %arg10[%c0_22, %c0_23] : memref<8x32xf32, #tpu.memory_space<vmem>>, vector<8x32xf32>
    tpu.vector_store %arg10[%c0_22, %c0_23], %30 {strides = array<i32>} : memref<8x32xf32, #tpu.memory_space<vmem>>, vector<8x32xf32>,
    %c0_i32_24 = arith.constant 0 : i32
    %32 = arith.cmpi eq, %arg2, %c0_i32_24 : i32
    %33 = arith.extui %32 : i1 to i32
    %c0_i32_25 = arith.constant 0 : i32
    %34 = arith.cmpi ne, %33, %c0_i32_25 : i32
    scf.if %34 {
      %c0_26 = arith.constant 0 : index
      %c0_27 = arith.constant 0 : index
      %35 = vector.load %arg10[%c0_26, %c0_27] : memref<8x32xf32, #tpu.memory_space<vmem>>, vector<8x32xf32>
      %c0_28 = arith.constant 0 : index
      %c0_29 = arith.constant 0 : index
      %36 = vector.load %arg9[%c0_28, %c0_29] : memref<8x1xf32, #tpu.memory_space<vmem>>, vector<8x1xf32>
      %cst_30 = arith.constant 1.000000e+00 : f32
      %37 = vector.broadcast %cst_30 : f32 to vector<8x1xf32>
      %38 = arith.divf %37, %36 : vector<8x1xf32>
      %cst_31 = arith.constant 1.000000e+00 : f32
      %39 = vector.broadcast %cst_31 : f32 to vector<8x1xf32>
      %40 = arith.mulf %38, %39 : vector<8x1xf32>
      %41 = vector.broadcast %40 : vector<8x1xf32> to vector<8x32xf32>
      %42 = arith.mulf %35, %41 : vector<8x32xf32>
      %c0_32 = arith.constant 0 : index
      %c0_33 = arith.constant 0 : index
      %c0_34 = arith.constant 0 : index
      %43 = vector.load %arg7[%c0_32, %c0_33, %c0_34] : memref<1x8x32xf32, #tpu.memory_space<vmem>>, vector<1x8x32xf32>
      %44 = vector.shape_cast %43 : vector<1x8x32xf32> to vector<8x32xf32>
      %45 = vector.shape_cast %42 : vector<8x32xf32> to vector<1x8x32xf32>
      tpu.vector_store %arg7[%c0_32, %c0_33, %c0_34], %45 {strides = array<i32>} : memref<1x8x32xf32, #tpu.memory_space<vmem>>, vector<1x8x32xf32>,
    } else {
    }
    return
  }
  func.func @transform_0(%arg0: i32, %arg1: i32, %arg2: i32, %arg3: memref<1xi32, #tpu.memory_space<smem>>) -> (i32, i32, i32) {
    %c0_i32 = arith.constant 0 : i32
    %c0_i32_0 = arith.constant 0 : i32
    return %arg0, %arg1, %c0_i32 : i32, i32, i32
  }
  func.func @transform_1(%arg0: i32, %arg1: i32, %arg2: i32, %arg3: memref<1xi32, #tpu.memory_space<smem>>) -> (i32, i32, i32) {
    %c0_i32 = arith.constant 0 : i32
    %c0_i32_0 = arith.constant 0 : i32
    return %arg0, %arg2, %c0_i32 : i32, i32, i32
  }
  func.func @transform_2(%arg0: i32, %arg1: i32, %arg2: i32, %arg3: memref<1xi32, #tpu.memory_space<smem>>) -> (i32, i32, i32) {
    %c0_i32 = arith.constant 0 : i32
    %c0_i32_0 = arith.constant 0 : i32
    return %arg0, %arg2, %c0_i32 : i32, i32, i32
  }
  func.func @transform_3(%arg0: i32, %arg1: i32, %arg2: i32, %arg3: memref<1xi32, #tpu.memory_space<smem>>) -> (i32, i32, i32) {
    %c0_i32 = arith.constant 0 : i32
    %c0_i32_0 = arith.constant 0 : i32
    return %arg0, %arg1, %c0_i32 : i32, i32, i32
  }
}

</mosaic_0001>

<bundles_post_ra>
// kernel: tpu_custom_call.1
= control target key start
LH: loop header
LB: loop body
LE: loop exit
PB: predicated region body
PF: predicated region fallthrough
CT: control target
= control target key end

     0   :  { %s1176_s0 = inlined_call_operand.<no memory space> [shape: s32[1], index: 0, kind: input, shape index: {}]   ;;  %s1177_s1 = inlined_call_operand.hbm [shape: f32[2,8,32], index: 1, kind: input, shape index: {}]   ;;  %s1178_s2 = inlined_call_operand.hbm [shape: f32[2,8,32], index: 2, kind: input, shape index: {}]   ;;  %s1179_s3 = inlined_call_operand.hbm [shape: f32[2,8,32], index: 3, kind: input, shape index: {}]   ;;  %s1180_s4 = inlined_call_operand.hbm [shape: f32[2,8,32], index: 4, kind: output, shape index: {}]  }
   0x1   :  { %1184 = sst [smem:[#allocation19_spill]] %s1178_s2 }
   0x2   :  { %10 = vsyncpa [#allocation8], 0 }
   0x3   :  { %12 = vsyncpa [#allocation8 + $0x1], 0 }
   0x4   :  { %13 = vsyncpa [#allocation11], 0 }
   0x5   :  { %15 = vsyncpa [#allocation11 + $0x1], 0 }
   0x6   :  { %16 = vsyncpa [#allocation9], 0 }
   0x7   :  { %18 = vsyncpa [#allocation9 + $0x1], 0  ;;  %s966_s15 = smov 0   ;;  %s968_s0 = smov 0  }
   0x8   :  { %s970_s16 = smov 0   ;;  %s972_s17 = smov 0  }
   0x9   :  { %s974_s18 = smov 0   ;;  %s976_s19 = smov 0  }
   0xa LB: > { %1185 = sst [smem:[#allocation17_spill]] %s927_s18  ;;  %s997_s20 = sadd.s32 4294967295, %s931_s19   ;;  %s931_s19 = sphi %s976_s19, %s24_s19   ;;  %s927_s18 = sphi %s974_s18, %s1197_s18   ;;  %s923_s17 = sphi %s972_s17, %s1196_s17   ;;  %s919_s16 = sphi %s970_s16, %s1200_s16   ;;  %s915_s0 = sphi %s968_s0, %s1199_s0   ;;  %s911_s15 = sphi %s966_s15, %s1198_s15  }
   0xb   : > { %s644_s21 = sadd.s32 4294967294, %s931_s19   ;;  %s43_s22 = sadd.s32 1, %s927_s18 }
   0xc   : > { %s52_s23 = sadd.s32 1, %s919_s16  ;;  %p45_p0 = scmp.ge.s32.totalorder %s43_s22, 2 }
   0xd   : > { %p59_p1 = scmp.ne.s32.totalorder %s919_s16, %s915_s0  ;;  %p60_p2 = scmp.eq.s32.totalorder %s931_s19, 0 }
   0xe   : > { %p65_p3 = scmp.ne.s32.totalorder %s915_s0, %s911_s15  ;;  %s1202_s22 = smov (%p45_p0, %s43_s22), 0 }
   0xf   : > { %1186 = sst [smem:[#allocation18_spill]] %s1202_s22  ;;  %p1009_p4 = por %p60_p2, %p59_p1 }
  0x10   : > { %p66_p5 = scmp.eq.s32.totalorder %s997_s20, 0  ;;  %s47_s25 = ssub.s32 %s927_s18, %s1202_s22 }
  0x11   : > { %p147_p6 = scmp.eq.s32.totalorder %s997_s20, 1  ;;  %p50_p7 = scmp.eq.s32.totalorder %s47_s25, 0 }
  0x12   : > { %p1017_p8 = por %p66_p5, %p65_p3  ;;  %p153_p10 = scmp.eq.s32.totalorder %s644_s21, 1 }
  0x13   : > { %p1021_p9 = por %p147_p6, %p59_p1  ;;  %p701_p13 = scmp.lt.s32.totalorder %s931_s19, 2 }
  0x14   : > { %s1026_s28 = scalar_select %p50_p7, %s919_s16, %s52_s23  }
  0x15   : > { %p1028_p11 = por %p153_p10, %p65_p3  ;;  %s1181_s30 = sand.u32 1, %s919_s16  }
  0x16   : > { %s1037_s5 = sshll.u32 %s1181_s30, 3  ;;  %s1040_s6 = sshll.u32 %s927_s18, 7 }
  0x17   : > { %p1044_p0 = pnand %p701_p13, %p1009_p4  ;;  %s192_s8 = sand.u32 1, %s931_s19  }
  0x18   : > { %s1192_s2 = sld [smem:[#allocation19_spill]]  ;;  %s196_s12 = scalar_lea.vmem [#allocation10], %s1037_s5 }
  0x19   : > { %s204_s13 = sshll.u32 %s196_s12, 4  ;;  %p653_p1 = scmp.ge.s32.totalorder %s931_s19, 1  ;;  %s205_s13 = int_to_ptr.vmem [resolvable:$true] %s204_s13 }
  0x1a   : > { %p228_p2 = scmp.lt.s32.totalorder %s931_s19, 3  ;;  %s1056_s14 = scalar_lea.sflag [#allocation11], %s192_s8 }
  0x1b   : > { %p765_p3 = pneg %p1044_p0  ;;  %s776_s21 = scalar_lea.vmem %s205_s13, 128 }
  0x1c   : > { %p777_p4 = scmp.ne.s32.totalorder %s205_s13, %s776_s21  ;;  %s933_s23 = smov [#allocation10]  }
  0x1d   : > { %s781_s24 = sshll.u32 %s933_s23, 4  ;;  %s782_s24 = int_to_ptr.vmem [resolvable:$false] %s781_s24 }
  0x1e   : > { %s202_s11 = scalar_lea.hbm %s1192_s2, %s1040_s6  ;;  %p779_p5 = pnand %p777_p4, %p765_p3 }
  0x1f   : > { %s783_s25 = scalar_lea.vmem %s782_s24, 256  ;;  %p784_p7 = scmp.lt.s32.totalorder %s205_s13, %s782_s24 }
  0x20   : > { %p780_p6 = pneg %p779_p5  ;;  %p785_p10 = scmp.lt.s32.totalorder %s783_s25, %s776_s21 }
  0x22   : > { %p786_p13 = por %p785_p10, %p784_p7 }
  0x24   : > { %p787_p12 = pnand %p786_p13, %p780_p6 }
  0x26   : > { %790 = shalt.err (!%p787_p12)
}
  0x27   : > { %693 = dma.hbm_to_vmem [thread:$0]  (!%p1044_p0), %s202_s11, 128, %s205_s13, %s1056_s14  }
  0x28   : > { %p1070_p4 = pnand %p653_p1, %p228_p2  ;;  %s183_s12 = scalar_lea.hbm %s1177_s1, %s1040_s6 }
  0x29   : > { %s177_s21 = scalar_lea.vmem [#allocation7], %s1037_s5  ;;  %s221_s30 = scalar_lea.hbm %s1179_s3, %s1040_s6 }
  0x2a   : > { %s185_s23 = sshll.u32 %s177_s21, 4  ;;  %s1194_s2 = sand.u32 1, %s919_s16   ;;  %s186_s23 = int_to_ptr.vmem [resolvable:$true] %s185_s23 }
  0x2b   : > { %s174_s22 = scalar_lea.sflag [#allocation8], %s1194_s2  ;;  %s804_s11 = scalar_lea.vmem %s186_s23, 128 }
  0x2c   : > { %p805_p12 = scmp.ne.s32.totalorder %s186_s23, %s804_s11  ;;  %s934_s13 = smov [#allocation7]  }
  0x2d   : > { %s809_s18 = sshll.u32 %s934_s13, 4  ;;  %s810_s18 = int_to_ptr.vmem [resolvable:$false] %s809_s18 }
  0x2e   : > { %p807_p1 = pnand %p805_p12, %p765_p3  ;;  %s811_s9 = scalar_lea.vmem %s810_s18, 256 }
  0x2f   : > { %p812_p5 = scmp.lt.s32.totalorder %s186_s23, %s810_s18  ;;  %p813_p6 = scmp.lt.s32.totalorder %s811_s9, %s804_s11 }
  0x30   : > { %p808_p2 = pneg %p807_p1 }
  0x31   : > { %p814_p7 = por %p813_p6, %p812_p5 }
  0x33   : > { %p815_p10 = pnand %p814_p7, %p808_p2 }
  0x35   : > { %818 = shalt.err (!%p815_p10)
}
  0x36   : > { %690 = dma.hbm_to_vmem [thread:$0]  (!%p1044_p0), %s183_s12, 128, %s186_s23, %s174_s22  }
  0x37   : > { %s215_s2 = scalar_lea.vmem [#allocation12], %s1037_s5  ;;  %s935_s24 = smov [#allocation12]  }
  0x38   : > { %s223_s10 = sshll.u32 %s215_s2, 4  ;;  %s837_s18 = sshll.u32 %s935_s24, 4  ;;  %s224_s10 = int_to_ptr.vmem [resolvable:$true] %s223_s10  ;;  %s838_s18 = int_to_ptr.vmem [resolvable:$false] %s837_s18 }
  0x39   : > { %s832_s21 = scalar_lea.vmem %s224_s10, 128  ;;  %s839_s25 = scalar_lea.vmem %s838_s18, 256 }
  0x3a   : > { %p833_p13 = scmp.ne.s32.totalorder %s224_s10, %s832_s21  ;;  %p840_p2 = scmp.lt.s32.totalorder %s224_s10, %s838_s18 }
  0x3b   : > { %p841_p5 = scmp.lt.s32.totalorder %s839_s25, %s832_s21 }
  0x3c   : > { %p835_p12 = pnand %p833_p13, %p765_p3 }
  0x3d   : > { %p842_p6 = por %p841_p5, %p840_p2 }
  0x3e   : > { %p836_p1 = pneg %p835_p12 }
  0x40   : > { %p843_p7 = pnand %p842_p6, %p836_p1 }
  0x42   : > { %846 = shalt.err (!%p843_p7)
}
  0x43   : > { %696 = dma.hbm_to_vmem [thread:$0]  (!%p1044_p0), %s221_s30, 128, %s224_s10, %s1056_s14  }
  0x44   : > { %232 = sbr.rel (%p1070_p4) target bundleno = 861 (0x35d), region = 32  ;;  %s1105_s12 = sand.u32 (!%p1070_p4), 1, %s915_s0  }
  0x45   : > { %s1108_s23 = sshll.u32 (!%p1070_p4), %s1105_s12, 3  ;;  %s235_s7 = scalar_lea.sflag (!%p1070_p4), [#allocation8], %s1105_s12 }
  0x46   : > { %s238_s11 = scalar_lea.vmem (!%p1070_p4), [#allocation7], %s1108_s23 }
  0x49   : > { %898 = dma.done.wait (%p1017_p8), %s235_s7, 128  }
  0x4a   : > { %900 = vsyncadd (%p1017_p8), %s235_s7, 4294967168  ;;  %s243_s30 = sand.u32 1, %s997_s20   ;;  %s247_s14 = scalar_lea.vmem [#allocation10], %s1108_s23 }
  0x4b   : > { %s244_s6 = scalar_lea.sflag [#allocation11], %s243_s30 }
  0x4c   : > { %902 = dma.done.wait (%p1017_p8), %s244_s6, 256  }
  0x4d   : > { %904 = vsyncadd (%p1017_p8), %s244_s6, 4294967040  ;;  %vm296_vm0 = vcmask 261120   ;;  %v936_v0 = vmov 0.0   ;;  %vm937_vm1 = vmmov 0   ;;  %v299_v1 = vld [vmem:[%s247_s14] sm:$0xff]  ;;  %v298_v2 = vld [vmem:[%s238_s11] sm:$0xff] }
  0x4e   : > { %669 = vmatprep.subr.mxu0 %v936_v0  ;;  %297 = vst.msk [vmem:[#allocation4] sm:$0xff] %vm296_vm0, %v936_v0  ;;  %671 = vmatprep.mubr.msk.f32.mxu0 %vm937_vm1, %v936_v0  ;;  %vm293_vm2 = vcmask 7168   ;;  %v938_v3 = vmov -inf   ;;  %vm379_vm3 = vcmask 64512   ;;  %v939_v7 = vmov 0   ;;  %s256_s20 = scalar_lea.vmem [#allocation12], %s1108_s23 }
  0x4f   : > { %674 = vmatprep.subr.mxu1 %v936_v0  ;;  %676 = vmatprep.mubr.msk.f32.mxu1 %vm937_vm1, %v936_v0  ;;  %294 = vst.msk [vmem:[#allocation2] sm:$0xff] %vm293_vm2, %v938_v3  ;;  %295 = vst.msk [vmem:[#allocation3] sm:$0xff] %vm293_vm2, %v936_v0  ;;  %v300_v12 = vld [vmem:[%s256_s20] sm:$0xff]  ;;  %s662_s26 = sshll.u32 %s923_s17, 7  ;;  %s288_s8 = scalar_lea.vmem [#allocation13], %s1108_s23 }
  0x50   : > { %670 = vmatpush3.xpose.msk.msra.mxu0 %vm296_vm0, %v299_v1  ;;  %755 = vset.pattern.permute.xlu0 %v939_v7  ;;  %s515_s13 = sshll.u32 %s288_s8, 4  ;;  %s513_s10 = scalar_lea.hbm %s1180_s4, %s662_s26  ;;  %s516_s13 = int_to_ptr.vmem [resolvable:$true] %s515_s13 }
  0x51   : > { %756 = vset.pattern.permute.xlu1 %v939_v7  ;;  %675 = vmatpush3.msra.mxu1 %v300_v12  ;;  %s501_s21 = scalar_lea.sflag [#allocation9], %s1105_s12  ;;  %s847_s24 = scalar_lea.vmem %s516_s13, 128 }
  0x52   : > { %p848_p8 = scmp.ne.s32.totalorder %s516_s13, %s847_s24  ;;  %s940_s18 = smov [#allocation13]  }
  0x53   : > { %672 = vmatmul.mubr.msk.f32.vlgmr.msra.gmra.mxu0 %vm296_vm0, %v298_v2  ;;  %s851_s17 = sshll.u32 %s940_s18, 4  ;;  %s852_s17 = int_to_ptr.vmem [resolvable:$false] %s851_s17 }
  0x54   : > { %p849_p0 = pnand %p848_p8, %p1021_p9  ;;  %s853_s25 = scalar_lea.vmem %s852_s17, 256 }
  0x55   : > { %v404_v26 = vld [vmem:[#allocation4] sm:$0xff]  ;;  %p854_p4 = scmp.lt.s32.totalorder %s516_s13, %s852_s17  ;;  %p855_p10 = scmp.lt.s32.totalorder %s853_s25, %s847_s24 }
  0x56   : > { %v378_v8 = vld [vmem:[#allocation2] sm:$0xff]  ;;  %v395_v20 = vld [vmem:[#allocation3] sm:$0xff]  ;;  %p850_p3 = pneg %p849_p0 }
  0x57   : > { %p856_p13 = por %p855_p10, %p854_p4 }
  0x59   : > { %p857_p12 = pnand %p856_p13, %p850_p3 }
 0x113   : > { %v374_v4 = vpop.f32.mrf.mxu0 }
 0x114   : > { %v380_v5 = vsel %vm379_vm3, %v374_v4, -inf }
 0x115   : > { %381 = vmax.xlane.f32.xlu0 %v380_v5  ;;  %v673_v6 = vpop.f32.mrf.mxu0 }
 0x19e   : > { %v382_v9 = vpop.xlane.xlu0 %381 }
 0x19f   : > { %v383_v10 = vmax.f32 %v378_v8, %v382_v9 }
 0x1a1   : > { %v384_v11 = vsub.f32 %v378_v8, %v383_v10  ;;  %403 = vst.msk [vmem:[#allocation2] sm:$0xff] %vm293_vm2, %v383_v10  ;;  %389 = vperm.xlu0 %755, %v383_v10  }
 0x1a3   : > { %v385_v17 = vmul.f32 1.442695, %v384_v11 }
 0x21c   : > { %v390_v13 = vpop.permute.xlu0 %389 }
 0x21d   : > { %v392_v14 = vsub.f32 %v374_v4, %v390_v13 }
 0x21f   : > { %v393_v15 = vmul.f32 1.442695, %v392_v14 }
 0x221   : > { %757 = vpow2.f32 %v393_v15 }
 0x222   : > { %759 = vpow2.f32 %v385_v17 }
 0x22e   : > { %v758_v16 = vpop.eup %757 }
 0x22f   : > { %677 = vmatmul.mubr.msk.f32.vlgmr.msra.gmra.mxu1 %vm379_vm3, %v758_v16  ;;  %v397_v18 = vsel %vm379_vm3, %v758_v16, 0.0  ;;  %v760_v19 = vpop.eup %759 }
 0x230   : > { %398 = vadd.xlane.f32.xlu1 %v397_v18  ;;  %v396_v21 = vmul.f32 %v760_v19, %v395_v20 }
 0x241   : > { %407 = vperm.xlu1 %756, %v760_v19  }
 0x2b9   : > { %v399_v22 = vpop.xlane.xlu1 %398 }
 0x2ba   : > { %v400_v23 = vadd.f32 %v399_v22, %v396_v21 }
 0x2bc   : > { %402 = vst.msk [vmem:[#allocation3] sm:$0xff] %vm293_vm2, %v400_v23 }
 0x2bd   : > { %v408_v27 = vpop.permute.xlu1 %407 }
 0x2be   : > { %v410_v28 = vmul.f32 %v408_v27, %v404_v26 }
 0x2c3   : > { %v490_v24 = vld [vmem:[#allocation3] sm:$0xff] }
 0x2c4   : > { %761 = vrcp.f32 %v490_v24 }
 0x2d1   : > { %v762_v25 = vpop.eup %761 }
 0x2d2   : > { %495 = vperm.xlu1 %756, %v762_v25  }
 0x2ef   : > { %v480_v29 = vpop.f32.mrf.mxu1 }
 0x2f0   : > { %v484_v30 = vadd.f32 %v480_v29, %v410_v28 }
 0x2f1   : > { %v678_v31 = vpop.f32.mrf.mxu1 }
 0x2f2   : > { %485 = vst.msk [vmem:[#allocation4] sm:$0xff] %vm296_vm0, %v484_v30 }
 0x2f9   : > { %v489_v32 = vld [vmem:[#allocation4] sm:$0xff] }
 0x34d   : > { %v496_v33 = vpop.permute.xlu1 %495 }
 0x34e   : > { %v498_v34 = vmul.f32 %v496_v33, %v489_v32 }
 0x350   : > { %499 = vst.msk [vmem:[%s288_s8] sm:$0xff] %vm296_vm0, %v498_v34 }
 0x351   : > { %860 = shalt.err (!%p857_p12)
}
 0x352   : > { %s861_s22 = scalar_lea.hbm %s513_s10, 128  ;;  %s865_s23 = scalar_lea.hbm %s1180_s4, 256 }
 0x353   : > { %p862_p1 = scmp.ne.s32.totalorder %s513_s10, %s861_s22  ;;  %p866_p6 = scmp.lt.s32.totalorder %s513_s10, %s1180_s4 }
 0x354   : > { %p867_p7 = scmp.lt.s32.totalorder %s865_s23, %s861_s22 }
 0x355   : > { %p863_p2 = pnand %p862_p1, %p1021_p9 }
 0x356   : > { %p868_p8 = por %p867_p7, %p866_p6 }
 0x357   : > { %p864_p5 = pneg %p863_p2 }
 0x359   : > { %p869_p0 = pnand %p868_p8, %p864_p5 }
 0x35b   : > { %872 = shalt.err (!%p869_p0)
}
 0x35c   : > { %685 = dma.vmem_to_hbm [thread:$0]  (%p1021_p9), %s516_s13, 128, %s513_s10, %s501_s21  }
 0x35d PF: > { %s527_s30 = sand.u32 1, %s911_s15   ;;  %p1195_p3 = scmp.ge.s32.totalorder %s931_s19, 2 }
 0x35e   : > { %s528_s6 = scalar_lea.sflag [#allocation9], %s527_s30 }
 0x35f   : > { %p698_p4 = pnand %p1195_p3, %p1028_p11 }
 0x361   : > { %p699_p10 = pneg %p698_p4 }
 0x363   : > { %906 = dma.done.wait (%p699_p10), %s528_s6, 128  }
 0x364   : > { %908 = vsyncadd (%p699_p10), %s528_s6, 4294967168  ;;  %s24_s19 = sadd.s32 1, %s931_s19   ;;  %s1196_s17 = sld [smem:[#allocation17_spill]] }
 0x365   : > { %p21_p13 = scmp.ge.s32.totalorder %s24_s19, 4   ;;  %s1197_s18 = sld [smem:[#allocation18_spill]] }
 0x366   : > { %s1198_s15 = smov %s915_s0  ;;  %s1199_s0 = smov %s919_s16 }
 0x367   : > { %s1200_s16 = smov %s1026_s28  ;;  %23 = sbr.rel (!%p21_p13) target bundleno = 10 (0xa), region = 109 }
 0x36c   :  { %533 = vsyncpa [#allocation8], 1 }
 0x36d   :  { %535 = vsyncpa [#allocation8 + $0x1], 1 }
 0x36e   :  { %536 = vsyncpa [#allocation11], 1 }
 0x36f   :  { %538 = vsyncpa [#allocation11 + $0x1], 1 }
 0x370   :  { %539 = vsyncpa [#allocation9], 1 }
 0x371   :  { %541 = vsyncpa [#allocation9 + $0x1], 1 }

</bundles_post_ra>
